<compile_context>
chip_gen: v6e
topology: v6e:2x2x1
jax: 0.10.0
libtpu: 0.0.40
codegen_flags: <defaults>
</compile_context>

<pallas_src>
import jax
import jax.numpy as jnp
from jax.experimental import pallas as pl
from jax.experimental.pallas import tpu as pltpu


def _ptmodule_kernel(x_ref, o_ref):
    # ((x + 2) * 3 - 1) / 1 / 2  ==  x * 1.5 + 2.5
    # Cast fused here: for int inputs the block arrives narrow and is widened
    # in-register; for float inputs this astype is a no-op.
    x = x_ref[...].astype(o_ref.dtype)
    o_ref[...] = x * 1.5 + 2.5


def _device_kind():
    try:
        return jax.devices()[0].device_kind.lower()
    except Exception:
        return ""


def _generation_config(itemsize, lane_w):
    """Per-generation (row_tile, vmem_limit_bytes, dimension_semantics)."""
    kind = _device_kind()
    core_parallel = getattr(pltpu, "CORE_PARALLEL", None)
    if "v7" in kind and core_parallel is not None:
        per_buf = 4 << 20            # 4 bufs * 4 MiB = 16 MiB << 64 MiB physical
        vmem_limit = 28 << 20
        semantics = (core_parallel,)  # 2 TCs/chip: split the stream across cores
    elif "v6" in kind:
        per_buf = 4 << 20
        vmem_limit = 32 << 20        # v6e scoped default; fewer grid steps
        semantics = ("parallel",)
    else:                            # v5e and older / unknown: stay conservative
        per_buf = 2 << 20            # 4 bufs * 2 MiB fits the 16 MiB default
        vmem_limit = None
        semantics = ("parallel",)
    row_tile = max(32, (per_buf // (itemsize * lane_w)) // 32 * 32)
    return row_tile, vmem_limit, semantics


def _run_tiled(x2d, compute_dtype, io_alias):
    """Run the kernel over a lane-dense (rows, lane_w) slab with a 1-D grid."""
    rows, lane_w = x2d.shape
    itemsize = max(jnp.dtype(x2d.dtype).itemsize, jnp.dtype(compute_dtype).itemsize)
    row_tile, vmem_limit, semantics = _generation_config(itemsize, lane_w)
    row_tile = min(row_tile, rows)

    def _call(dim_sem):
        cp_kwargs = {"dimension_semantics": dim_sem}
        if vmem_limit is not None:
            cp_kwargs["vmem_limit_bytes"] = vmem_limit
        return pl.pallas_call(
            _ptmodule_kernel,
            out_shape=jax.ShapeDtypeStruct((rows, lane_w), compute_dtype),
            grid_spec=pltpu.PrefetchScalarGridSpec(
                num_scalar_prefetch=0,
                grid=(pl.cdiv(rows, row_tile),),
                in_specs=[pl.BlockSpec((row_tile, lane_w), lambda i: (i, 0))],
                out_specs=pl.BlockSpec((row_tile, lane_w), lambda i: (i, 0)),
            ),
            compiler_params=pltpu.CompilerParams(**cp_kwargs),
            input_output_aliases=io_alias,
        )(x2d)

    try:
        return _call(semantics)
    except Exception:
        if semantics == ("parallel",):
            raise
        return _call(("parallel",))  # safe fallback if CORE_PARALLEL is rejected


def ptmodule_forward(x, donate_input=False):
    """Applies ((x+2)*3-1)/1/2 elementwise. Accepts any shape (e.g. NCHW)."""
    orig_shape = x.shape
    orig_dtype = x.dtype

    # torch.div promotes int/bool inputs to float; mirror that. f64 has no
    # Pallas TPU lowering -> compute in f32.
    if jnp.issubdtype(orig_dtype, jnp.floating):
        if orig_dtype == jnp.float64:
            compute_dtype = jnp.float32
            kern_in = x.astype(jnp.float32)
        else:
            compute_dtype = orig_dtype
            kern_in = x
    elif orig_dtype == jnp.bool_:
        compute_dtype = jnp.float32
        kern_in = x.astype(jnp.float32)   # bool blocks are awkward; rare, tiny cast
    else:  # integers: cast fused INSIDE the kernel (no extra HBM pass)
        compute_dtype = jnp.float32
        kern_in = x

    n_elem = kern_in.size
    if n_elem == 0:
        return jnp.zeros(orig_shape, compute_dtype)

    io_alias = {0: 0} if (donate_input and kern_in.dtype == compute_dtype) else {}
    flat = kern_in.reshape(-1)   # zero-copy

    if n_elem % 128 == 0:
        # Lane-dense slab, zero-copy reshape. Prefer the widest lane width that
        # still keeps >= 8 rows (full sublane utilization).
        lane_w = 128
        for cand in (4096, 2048, 1024, 512, 256, 128):
            if n_elem % cand == 0 and n_elem // cand >= 8:
                lane_w = cand
                break
        else:
            for cand in (4096, 2048, 1024, 512, 256, 128):
                if n_elem % cand == 0:
                    lane_w = cand
                    break
        x2d = flat.reshape(n_elem // lane_w, lane_w)
        out2d = _run_tiled(x2d, compute_dtype, io_alias)
        return out2d.reshape(orig_shape)

    # Ragged size (n_elem % 128 != 0).
    in_bytes = n_elem * jnp.dtype(kern_in.dtype).itemsize
    out_bytes = n_elem * jnp.dtype(compute_dtype).itemsize
    if in_bytes + out_bytes <= (8 << 20):
        # Small enough: single full-extent block (always legal), zero extra copies.
        x2d = flat.reshape(1, n_elem)
        out2d = pl.pallas_call(
            _ptmodule_kernel,
            out_shape=jax.ShapeDtypeStruct((1, n_elem), compute_dtype),
            in_specs=[pl.BlockSpec((1, n_elem), lambda: (0, 0))],
            out_specs=pl.BlockSpec((1, n_elem), lambda: (0, 0)),
        )(x2d)
        return out2d.reshape(orig_shape)

    # TODO(synk): large ragged sizes fall back to a pad+slice copy; a masked
    # 1-D grid over the flat array would remove the extra HBM pass.
    lane_w = 128
    pad = (-n_elem) % lane_w
    flat_p = jnp.pad(flat, (0, pad))
    x2d = flat_p.reshape(flat_p.size // lane_w, lane_w)
    out2d = _run_tiled(x2d, compute_dtype, {})
    return out2d.reshape(-1)[:n_elem].reshape(orig_shape)


if __name__ == "__main__":
    key = jax.random.PRNGKey(0)
    x = jax.random.normal(key, (2, 4, 16, 16), dtype=jnp.float32)  # NCHW

    y = ptmodule_forward(x)
    jax.block_until_ready(y)

    # Reference check against plain JAX semantics of the PyTorch module.
    ref = ((x + 2.0) * 3.0 - 1.0) / 1.0 / 2.0
    assert y.shape == x.shape and y.dtype == x.dtype
    assert jnp.allclose(y, ref, atol=1e-6, rtol=1e-6)

    print("KERNEL_OK")
</pallas_src>

<mosaic_0001>
module attributes {stable_mosaic.version = 11 : i64} {
  func.func @_ptmodule_kernel(%arg0: i32, %arg1: memref<8x256xf32, #tpu.memory_space<vmem>>, %arg2: memref<8x256xf32, #tpu.memory_space<vmem>>) attributes {dimension_semantics = [#tpu.dimension_semantics<parallel>], iteration_bounds = array<i64: 1>, scalar_prefetch = 0 : i64, scratch_operands = 0 : i64, tpu.core_type = #tpu.core_type<tc>, window_params = [{transform_indices = @transform_0, window_bounds = array<i64: 8, 256>}, {transform_indices = @transform_1, window_bounds = array<i64: 8, 256>}]} {
    %c0 = arith.constant 0 : index
    %c0_0 = arith.constant 0 : index
    %0 = vector.load %arg1[%c0, %c0_0] : memref<8x256xf32, #tpu.memory_space<vmem>>, vector<8x256xf32>
    %cst = arith.constant 1.500000e+00 : f32
    %1 = vector.broadcast %cst : f32 to vector<8x256xf32>
    %2 = arith.mulf %0, %1 : vector<8x256xf32>
    %cst_1 = arith.constant 2.500000e+00 : f32
    %3 = vector.broadcast %cst_1 : f32 to vector<8x256xf32>
    %4 = arith.addf %2, %3 : vector<8x256xf32>
    %c0_2 = arith.constant 0 : index
    %c0_3 = arith.constant 0 : index
    %5 = vector.load %arg2[%c0_2, %c0_3] : memref<8x256xf32, #tpu.memory_space<vmem>>, vector<8x256xf32>
    tpu.vector_store %arg2[%c0_2, %c0_3], %4 {strides = array<i32>} : memref<8x256xf32, #tpu.memory_space<vmem>>, vector<8x256xf32>,
    return
  }
  func.func @transform_0(%arg0: i32) -> (i32, i32) {
    %c0_i32 = arith.constant 0 : i32
    %c0_i32_0 = arith.constant 0 : i32
    return %arg0, %c0_i32 : i32, i32
  }
  func.func @transform_1(%arg0: i32) -> (i32, i32) {
    %c0_i32 = arith.constant 0 : i32
    %c0_i32_0 = arith.constant 0 : i32
    return %arg0, %c0_i32 : i32, i32
  }
}

</mosaic_0001>

<bundles_post_ra>
// kernel: tpu_custom_call.1
= control target key start
LH: loop header
LB: loop body
LE: loop exit
PB: predicated region body
PF: predicated region fallthrough
CT: control target
= control target key end

     0   :  { %6 = vsyncpa [#allocation3], 0  ;;  %s108_s0 = inlined_call_operand.hbm [shape: f32[8,256], index: 0, kind: input, shape index: {}]   ;;  %s109_s1 = inlined_call_operand.hbm [shape: f32[8,256], index: 1, kind: output, shape index: {}]  }
   0x1   :  { %7 = vsyncpa [#allocation4], 0  ;;  %s90_s6 = smov [#allocation2]  }
   0x2   :  { %s14_s7 = sshll.u32 %s90_s6, 4  ;;  %s15_s7 = int_to_ptr.vmem [resolvable:$true] %s14_s7 }
   0x3   :  { %s54_s8 = scalar_lea.vmem %s15_s7, 256  ;;  %p59_p1 = scmp.lt.s32.totalorder %s15_s7, %s15_s7 }
   0x4   :  { %p55_p0 = scmp.ne.s32.totalorder %s15_s7, %s54_s8  ;;  %p60_p2 = scmp.lt.s32.totalorder %s54_s8, %s54_s8 }
   0x6   :  { %p61_p3 = por %p60_p2, %p59_p1 }
   0x8   :  { %p62_p4 = pnand %p61_p3, %p55_p0 }
   0xa   :  { %65 = shalt.err (!%p62_p4)
}
   0xb   :  { %17 = dma.hbm_to_vmem [thread:$0]  %s108_s0, 256, %s15_s7, [#allocation3]  }
   0xc   :  { %86 = dma.done.wait [#allocation3], 256  }
   0xd   :  { %87 = vsyncadd [#allocation3], 4294967040  ;;  %v21_v0 = vld [vmem:[#allocation2] sm:$0xff]  ;;  %v22_v1 = vld [vmem:[#allocation2 + $0x8] sm:$0xff]  ;;  %s91_s11 = smov [#allocation5]  }
   0xe   :  { %s35_s12 = sshll.u32 %s91_s11, 4  ;;  %v23_v2 = vmul.f32 1.5, %v21_v0  ;;  %v24_v3 = vmul.f32 1.5, %v22_v1  ;;  %s36_s12 = int_to_ptr.vmem [resolvable:$true] %s35_s12 }
   0xf   :  { %s66_s13 = scalar_lea.vmem %s36_s12, 256  ;;  %p71_p6 = scmp.lt.s32.totalorder %s36_s12, %s36_s12 }
  0x10   :  { %v25_v4 = vadd.f32 2.5, %v23_v2  ;;  %v26_v5 = vadd.f32 2.5, %v24_v3  ;;  %p67_p5 = scmp.ne.s32.totalorder %s36_s12, %s66_s13  ;;  %p72_p7 = scmp.lt.s32.totalorder %s66_s13, %s66_s13 }
  0x12   :  { %27 = vst [vmem:[#allocation5] sm:$0xff] %v25_v4  ;;  %28 = vst [vmem:[#allocation5 + $0x8] sm:$0xff] %v26_v5  ;;  %p73_p8 = por %p72_p7, %p71_p6 }
  0x14   :  { %p74_p9 = pnand %p73_p8, %p67_p5 }
  0x16   :  { %77 = shalt.err (!%p74_p9)
}
  0x17   :  { %38 = dma.vmem_to_hbm [thread:$0]  %s36_s12, 256, %s109_s1, [#allocation4]  }
  0x18   :  { %88 = dma.done.wait [#allocation4], 256  }
  0x19   :  { %89 = vsyncadd [#allocation4], 4294967040 }
  0x1a   :  { %42 = vsyncpa [#allocation3], 1 }
  0x1b   :  { %43 = vsyncpa [#allocation4], 1 }

</bundles_post_ra>
